<compile_context>
chip_gen: v7x
topology: tpu7x:2x2x1
jax: 0.10.0
libtpu: 0.0.40
codegen_flags: <defaults>
</compile_context>

<pallas_src>
import functools

import jax
import jax.numpy as jnp
import numpy as np
from jax.experimental import pallas as pl
from jax.experimental.pallas import tpu as pltpu


def _round_up(x, m):
    return (x + m - 1) // m * m


# ---------------------------------------------------------------------------
# Fused merge-gate kernel (one node tile per grid step).
#   z   = x @ W + b                       # [BN, 2H]  (packed cols: tanh | sig)
#   out = tanh(z[:, :H]) * sigmoid(z[:, H:])
# W / b use a constant index_map -> DMA'd to VMEM once, resident across grid.
# ---------------------------------------------------------------------------
def _merge_kernel(x_ref, w_ref, b_ref, out_ref):
    H = out_ref.shape[-1]
    x = x_ref[...].astype(w_ref.dtype)            # bf16 cast (VPU) when W is bf16
    z = jnp.dot(x, w_ref[...], preferred_element_type=jnp.float32) + b_ref[...]
    z_t = z[:, :H]
    z_g = z[:, H:]
    # sigmoid(x) == 0.5*(tanh(x/2)+1): one EUP op per gate.
    out_ref[...] = jnp.tanh(z_t) * (0.5 * (jnp.tanh(0.5 * z_g) + 1.0))


# ---------------------------------------------------------------------------
# Parameters (torch-equivalent Linear weights, stored as [in, out], input rows
# ordered (node | sub_tree_1 | sub_tree_2) to match the activation concat).
# ---------------------------------------------------------------------------
def init_params(key, hidden_size, embedding_size):
    H, E = hidden_size, embedding_size
    k1, k2, k3, k4 = jax.random.split(key, 4)
    return {
        'merge_w':   jax.random.normal(k1, (E + 2 * H, H), jnp.float32) * 0.1,
        'merge_b':   jax.random.normal(k2, (1, H), jnp.float32) * 0.1,
        'merge_g_w': jax.random.normal(k3, (E + 2 * H, H), jnp.float32) * 0.1,
        'merge_g_b': jax.random.normal(k4, (1, H), jnp.float32) * 0.1,
    }


def prepare_packed(params, weight_dtype=jnp.bfloat16):
    """One-time weight packing (hoisted out of the per-step forward).

    Packs merge|merge_g along the output dim into a single [E+2H, 2H] weight
    (bf16 by default, halving per-call HBM weight traffic).  Bias stays f32.
    """
    w = jnp.concatenate([params['merge_w'], params['merge_g_w']],
                        axis=1).astype(weight_dtype)                 # [E+2H, 2H]
    b = jnp.concatenate([params['merge_b'], params['merge_g_b']],
                        axis=1).astype(jnp.float32)                  # [1, 2H]
    return {'w': jax.device_put(w), 'b': jax.device_put(b)}


# ---------------------------------------------------------------------------
# Batched forward: [N, E], [N, H], [N, H] for N tree nodes / decode steps.
# Batch as many nodes as possible per call so the resident weight DMA is
# amortized and each MXU pass is actually filled.
# ---------------------------------------------------------------------------
@functools.partial(jax.jit, static_argnames=("block_n",))
def merge_forward(packed, node_embedding, sub_tree_1, sub_tree_2, *,
                  block_n=128):
    N, E = node_embedding.shape
    H = sub_tree_1.shape[1]
    w, b = packed['w'], packed['b']
    K = w.shape[0]
    assert K == E + 2 * H and w.shape[1] == 2 * H

    # Activation concat is tiny and done once per call (fused by XLA); the
    # kernel then does a single stacked-K matmul.
    x = jnp.concatenate(
        [node_embedding, sub_tree_1, sub_tree_2], axis=1).astype(jnp.float32)

    # Node-tile size: multiple of 8 sublanes; pad N up to whole tiles.
    bn = min(block_n, _round_up(N, 8))
    n_pad = _round_up(N, bn)
    if n_pad != N:
        x = jnp.pad(x, ((0, n_pad - N), (0, 0)))
    grid = (n_pad // bn,)

    # VMEM budget: resident weights (+bias) + double-buffered x / out tiles.
    w_itemsize = jnp.dtype(w.dtype).itemsize
    vmem_needed = (2 * (w.size * w_itemsize + b.size * 4)
                   + 2 * bn * K * 4 + 2 * bn * H * 4)
    compiler_kwargs = dict(dimension_semantics=("parallel",))
    if vmem_needed > 30 * 1024 * 1024:
        # v7x has 64 MiB VMEM (vs 128 MiB on v5e/v6e): raise the scoped limit
        # only when the resident weight slab needs it.
        # TODO(synk): tile the 2H output dim for weights that exceed VMEM.
        compiler_kwargs["vmem_limit_bytes"] = min(int(vmem_needed * 1.25),
                                                  96 * 1024 * 1024)

    cost = pl.CostEstimate(
        flops=2 * n_pad * K * 2 * H,
        transcendentals=2 * n_pad * H,
        bytes_accessed=(n_pad * K * 4 + w.size * w_itemsize + b.size * 4
                        + n_pad * H * 4),
    )

    out = pl.pallas_call(
        _merge_kernel,
        out_shape=jax.ShapeDtypeStruct((n_pad, H), jnp.float32),
        grid=grid,
        in_specs=[
            pl.BlockSpec((bn, K), lambda i: (i, 0)),       # activations: tiled
            pl.BlockSpec((K, 2 * H), lambda i: (0, 0)),    # weights: resident
            pl.BlockSpec((1, 2 * H), lambda i: (0, 0)),    # bias: resident
        ],
        out_specs=pl.BlockSpec((bn, H), lambda i: (i, 0)),
        compiler_params=pltpu.CompilerParams(**compiler_kwargs),
        cost_estimate=cost,
    )(x, w, b)
    return out[:N]


# ---------------------------------------------------------------------------
# Pure-JAX reference (mirrors the PyTorch forward, eval-mode dropout).
# ---------------------------------------------------------------------------
def merge_reference(params, node_embedding, sub_tree_1, sub_tree_2):
    cat = jnp.concatenate([node_embedding, sub_tree_1, sub_tree_2], axis=1)
    sub_tree = jnp.tanh(cat @ params['merge_w'] + params['merge_b'])
    sub_tree_g = jax.nn.sigmoid(cat @ params['merge_g_w'] + params['merge_g_b'])
    return sub_tree * sub_tree_g


if __name__ == "__main__":
    H, E = 32, 32   # hidden_size, embedding_size (toy; production H % 128 == 0)

    key = jax.random.PRNGKey(0)
    kp, kd = jax.random.split(key)
    params = init_params(kp, H, E)

    packed_bf16 = prepare_packed(params)                         # default bf16
    packed_f32 = prepare_packed(params, weight_dtype=jnp.float32)

    for N in (2, 64):   # a decode-step-sized call and a batched-node call
        kn, k1, k2 = jax.random.split(jax.random.fold_in(kd, N), 3)
        node = jax.random.normal(kn, (N, E), jnp.float32)
        s1 = jax.random.normal(k1, (N, H), jnp.float32)
        s2 = jax.random.normal(k2, (N, H), jnp.float32)

        ref = merge_reference(params, node, s1, s2)

        out = jax.block_until_ready(merge_forward(packed_f32, node, s1, s2))
        np.testing.assert_allclose(np.asarray(out), np.asarray(ref),
                                   rtol=1e-4, atol=1e-4)

        out = jax.block_until_ready(merge_forward(packed_bf16, node, s1, s2))
        np.testing.assert_allclose(np.asarray(out), np.asarray(ref),
                                   rtol=2e-2, atol=2e-2)

    print("KERNEL_OK")
</pallas_src>

<mosaic_0001>
module attributes {stable_mosaic.version = 11 : i64} {
  func.func @_merge_kernel(%arg0: i32, %arg1: memref<8x96xf32, #tpu.memory_space<vmem>>, %arg2: memref<96x64xf32, #tpu.memory_space<vmem>>, %arg3: memref<1x64xf32, #tpu.memory_space<vmem>>, %arg4: memref<8x32xf32, #tpu.memory_space<vmem>>) attributes {dimension_semantics = [#tpu.dimension_semantics<parallel>], iteration_bounds = array<i64: 1>, scalar_prefetch = 0 : i64, scratch_operands = 0 : i64, tpu.core_type = #tpu.core_type<tc>, window_params = [{transform_indices = @transform_0, window_bounds = array<i64: 8, 96>}, {pipeline_mode = #tpu.pipeline_mode<synchronous>, transform_indices = @transform_1, window_bounds = array<i64: 96, 64>}, {pipeline_mode = #tpu.pipeline_mode<synchronous>, transform_indices = @transform_2, window_bounds = array<i64: 1, 64>}, {transform_indices = @transform_3, window_bounds = array<i64: 8, 32>}]} {
    %c0 = arith.constant 0 : index
    %c0_0 = arith.constant 0 : index
    %0 = vector.load %arg1[%c0, %c0_0] : memref<8x96xf32, #tpu.memory_space<vmem>>, vector<8x96xf32>
    %c0_1 = arith.constant 0 : index
    %c0_2 = arith.constant 0 : index
    %1 = vector.load %arg2[%c0_1, %c0_2] : memref<96x64xf32, #tpu.memory_space<vmem>>, vector<96x64xf32>
    %cst = arith.constant dense<0.000000e+00> : vector<8x64xf32>
    %2 = tpu.matmul %0, %1, %cst {dimension_numbers = #tpu.dot_dimension_numbers<[1], [0], [0], [1], [0, 0, 1, 1], [], []>} : vector<8x96xf32>, vector<96x64xf32>, vector<8x64xf32> -> vector<8x64xf32>
    %c0_3 = arith.constant 0 : index
    %c0_4 = arith.constant 0 : index
    %3 = vector.load %arg3[%c0_3, %c0_4] : memref<1x64xf32, #tpu.memory_space<vmem>>, vector<1x64xf32>
    %4 = vector.broadcast %3 : vector<1x64xf32> to vector<8x64xf32>
    %5 = arith.addf %2, %4 : vector<8x64xf32>
    %6 = vector.extract_strided_slice %5 {offsets = [0, 0], sizes = [8, 32], strides = [1, 1]} : vector<8x64xf32> to vector<8x32xf32>
    %7 = vector.extract_strided_slice %5 {offsets = [0, 32], sizes = [8, 32], strides = [1, 1]} : vector<8x64xf32> to vector<8x32xf32>
    %8 = math.tanh %6 : vector<8x32xf32>
    %cst_5 = arith.constant 5.000000e-01 : f32
    %9 = vector.broadcast %cst_5 : f32 to vector<8x32xf32>
    %10 = arith.mulf %9, %7 : vector<8x32xf32>
    %11 = math.tanh %10 : vector<8x32xf32>
    %cst_6 = arith.constant 1.000000e+00 : f32
    %12 = vector.broadcast %cst_6 : f32 to vector<8x32xf32>
    %13 = arith.addf %11, %12 : vector<8x32xf32>
    %cst_7 = arith.constant 5.000000e-01 : f32
    %14 = vector.broadcast %cst_7 : f32 to vector<8x32xf32>
    %15 = arith.mulf %14, %13 : vector<8x32xf32>
    %16 = arith.mulf %8, %15 : vector<8x32xf32>
    %c0_8 = arith.constant 0 : index
    %c0_9 = arith.constant 0 : index
    %17 = vector.load %arg4[%c0_8, %c0_9] : memref<8x32xf32, #tpu.memory_space<vmem>>, vector<8x32xf32>
    tpu.vector_store %arg4[%c0_8, %c0_9], %16 {strides = array<i32>} : memref<8x32xf32, #tpu.memory_space<vmem>>, vector<8x32xf32>,
    return
  }
  func.func @transform_0(%arg0: i32) -> (i32, i32) {
    %c0_i32 = arith.constant 0 : i32
    %c0_i32_0 = arith.constant 0 : i32
    return %arg0, %c0_i32 : i32, i32
  }
  func.func @transform_1(%arg0: i32) -> (i32, i32) {
    %c0_i32 = arith.constant 0 : i32
    %c0_i32_0 = arith.constant 0 : i32
    %c0_i32_1 = arith.constant 0 : i32
    return %c0_i32, %c0_i32_0 : i32, i32
  }
  func.func @transform_2(%arg0: i32) -> (i32, i32) {
    %c0_i32 = arith.constant 0 : i32
    %c0_i32_0 = arith.constant 0 : i32
    %c0_i32_1 = arith.constant 0 : i32
    return %c0_i32, %c0_i32_0 : i32, i32
  }
  func.func @transform_3(%arg0: i32) -> (i32, i32) {
    %c0_i32 = arith.constant 0 : i32
    %c0_i32_0 = arith.constant 0 : i32
    return %arg0, %c0_i32 : i32, i32
  }
}

</mosaic_0001>

<bundles_post_ra>
// kernel: merge_forward.1
= control target key start
LH: loop header
LB: loop body
LE: loop exit
PB: predicated region body
PF: predicated region fallthrough
CT: control target
= control target key end

     0   :  { %v192_v0 = vmov 0.0|0.0   ;;  %vm193_vm0 = vmmov 0   ;;  %v194_v4 = vmov 0.0   ;;  %vm34_vm1 = vcmask 785408   ;;  %s261_s1 = inlined_call_operand.vmem [shape: f32[96,64], index: 1, kind: input, shape index: {}]   ;;  %s262_s0 = inlined_call_operand.vmem [shape: f32[8,96], index: 0, kind: input, shape index: {}]   ;;  %s263_s2 = inlined_call_operand.vmem [shape: f32[1,64], index: 2, kind: input, shape index: {}]   ;;  %s264_s3 = inlined_call_operand.vmem [shape: f32[8,32], index: 3, kind: output, shape index: {}]  }
   0x1   :  { %166 = vmatprep.subr.bf16.mxu0 %v192_v0  ;;  %v15_v1 = vld [vmem:[%s261_s1] sm:$0xff]  ;;  %v16_v2 = vld [vmem:[%s261_s1 + $0x8] sm:$0xff]  ;;  %v17_v3 = vld [vmem:[%s261_s1 + $0x10] sm:$0xff]  ;;  %163 = vmatprep.mubr.msk.f32.mxu0 %vm193_vm0, %v194_v4  ;;  %vm118_vm2 = vcmask 261120  }
   0x2   :  { %v167_v5 = vpack.c.bf16 %v16_v2, %v15_v1  ;;  %v18_v6 = vld [vmem:[%s261_s1 + $0x18] sm:$0xff]  ;;  %v19_v8 = vld [vmem:[%s261_s1 + $0x20] sm:$0xff]  ;;  %v20_v9 = vld [vmem:[%s261_s1 + $0x28] sm:$0xff] }
   0x3   :  { %v170_v7 = vpack.c.bf16 %v18_v6, %v17_v3  ;;  %v173_v10 = vpack.c.bf16 %v20_v9, %v19_v8  ;;  %v21_v11 = vld [vmem:[%s261_s1 + $0x30] sm:$0xff]  ;;  %v22_v12 = vld [vmem:[%s261_s1 + $0x38] sm:$0xff]  ;;  %v23_v14 = vld [vmem:[%s261_s1 + $0x40] sm:$0xff] }
   0x4   :  { %168 = vmatpush3.bf16.msra.mxu0 %v167_v5  ;;  %v176_v13 = vpack.c.bf16 %v22_v12, %v21_v11  ;;  %v24_v15 = vld [vmem:[%s261_s1 + $0x48] sm:$0xff]  ;;  %v25_v17 = vld [vmem:[%s261_s1 + $0x50] sm:$0xff]  ;;  %v26_v18 = vld [vmem:[%s261_s1 + $0x58] sm:$0xff]  ;;  %s195_s1 = smov 96  }
   0x5   :  { %169 = vmatprep.subr.bf16.mxu0 %v192_v0  ;;  %v179_v16 = vpack.c.bf16 %v24_v15, %v23_v14  ;;  %v182_v19 = vpack.c.bf16 %v26_v18, %v25_v17  ;;  %v14_v20 = vld [vmem:[%s262_s0] sm:$0xff] }
   0x6   :  { %v124_v21 = vld [vmem:[%s263_s2] ss:$0 sm:$0xff] }
   0x8   :  { %171 = vmatpush3.bf16.msra.mxu0 %v170_v7 }
   0x9   :  { %172 = vmatprep.subr.bf16.mxu0 %v192_v0 }
   0xc   :  { %174 = vmatpush3.bf16.msra.mxu0 %v173_v10 }
   0xd   :  { %175 = vmatprep.subr.bf16.mxu0 %v192_v0 }
  0x10   :  { %177 = vmatpush3.bf16.msra.mxu0 %v176_v13 }
  0x11   :  { %178 = vmatprep.subr.bf16.mxu0 %v192_v0 }
  0x14   :  { %180 = vmatpush3.bf16.msra.mxu0 %v179_v16 }
  0x15   :  { %181 = vmatprep.subr.bf16.mxu0 %v192_v0 }
  0x18   :  { %183 = vmatpush3.bf16.msra.mxu0 %v182_v19 }
  0x1b   :  { %164 = vmatmul.mubr.msk.f32.vlgmr.msra.gmra.mrb[0].mxu0 %vm34_vm1, %v14_v20 }
  0xee   :  { %v104_v22 = vpop.f32.mrb[0].mxu0 }
  0xef   :  { %v105_v23 = vadd.f32 %v124_v21, %v104_v22  ;;  %v165_v24 = vpop.f32.mrb[1].mxu0 }
  0xf1   :  { %v109_v25 = vmul.f32 0.5, %v105_v23 }
  0xf3   :  { %188 = vtanh.f32 %v109_v25 }
  0xf4   :  { %190 = vtanh.f32 %v105_v23 }
  0xfd   :  { %v189_v26 = vpop.eup %188 }
  0xfe   :  { %v111_v27 = vadd.f32 1.0, %v189_v26  ;;  %v191_v29 = vpop.eup %190 }
 0x100   :  { %v112_v28 = vmul.f32 0.5, %v111_v27 }
 0x102   :  { %114 = vrot.lane.b32.xlu0 %v112_v28, %s195_s1 }
 0x174   :  { %v115_v30 = vpop.permute.xlu0 %114 }
 0x175   :  { %v117_v31 = vmul.f32 %v191_v29, %v115_v30 }
 0x177   :  { %119 = vst.msk [vmem:[%s264_s3] sm:$0xff] %vm118_vm2, %v117_v31 }

</bundles_post_ra>
